<compile_context>
chip_gen: v7x
topology: tpu7x:2x2x1
jax: 0.10.0
libtpu: 0.0.40
codegen_flags: <defaults>
</compile_context>

<pallas_src>
import functools

import jax
import jax.numpy as jnp
from jax.experimental import pallas as pl
from jax.experimental.pallas import tpu as pltpu


def _cdiv(a, b):
    return -(-a // b)


def _round_up(x, m):
    return _cdiv(x, m) * m


def _vmem_capacity_bytes():
    try:
        return int(pltpu.get_tpu_info().vmem_capacity_bytes)
    except Exception:
        return 64 * 1024 * 1024  # conservative default = v7x per-TensorCore VMEM


# ----------------------------- Pallas kernel --------------------------------

def _decoder_kernel(x_ref, w1t_ref, b1_ref, w2t_ref, b2_ref, o_ref):
    """Fused 1x1 conv -> ReLU -> 1x1 conv on one (C_IN, TN) pixel tile.

    x_ref   : (C_IN, TN)     f32, pixels on the lane axis (read from HBM once)
    w1t_ref : (N_HID, C_IN)  bf16 (resident)
    b1_ref  : (N_HID, 1)     f32
    w2t_ref : (C_OUT, N_HID) bf16 (resident)
    b2_ref  : (C_OUT, 1)     f32
    o_ref   : (C_OUT, TN)    f32 (lane-dense output block)
    """
    # Cast to bf16 only inside VMEM; HBM traffic for x stays f32-read-once.
    x = x_ref[...].astype(jnp.bfloat16)
    # Dominant matmul: bf16 operands, f32 accumulation on the MXU.
    h = jnp.dot(w1t_ref[...], x, preferred_element_type=jnp.float32)
    h = jnp.maximum(h + b1_ref[...], 0.0)               # f32 bias + ReLU (VPU)
    # Tiny second matmul (K = n_hid): explicit bf16 operands, f32 accumulation.
    o = jnp.dot(w2t_ref[...], h.astype(jnp.bfloat16),
                preferred_element_type=jnp.float32)
    o_ref[...] = o + b2_ref[...]


# ------------------------------ tiling helpers -------------------------------

def _pick_pixel_tile(hw, c_in, batch, *, bytes_per_elem=4):
    """Pick the lane tile TN (multiple of 128).

    * double-buffered f32 input tile fits a generation-aware VMEM budget,
    * TN <= 512 so the f32 intermediate (N_HID, TN) stays vreg-friendly,
    * the parallel grid keeps >= 4 steps where possible (v7x has 2 TCs).
    """
    budget = max(8 << 20, int(_vmem_capacity_bytes() * 0.45))
    max_tn = budget // (2 * bytes_per_elem * max(c_in, 1))
    max_tn = max(128, (max_tn // 128) * 128)
    tn = int(min(512, max_tn, _round_up(hw, 128)))
    while tn > 128 and batch * _cdiv(hw, tn) < 4:
        tn -= 128
    return tn


def _vmem_limit_bytes(c_in, n_hid, c_out, tn):
    """vmem_limit_bytes derived from the actual footprint, capped per chip."""
    x_dbl = 2 * 4 * c_in * tn            # f32 input tile, double-buffered
    x_bf16_tmp = 2 * c_in * tn           # in-kernel bf16 copy of the tile
    o_dbl = 2 * 4 * c_out * tn           # f32 output tile, double-buffered
    params = 2 * (2 * n_hid * c_in + 4 * n_hid + 2 * c_out * n_hid + 4 * c_out)
    h_tmp = 2 * 4 * n_hid * tn           # f32 intermediate (x2 for headroom)
    needed = x_dbl + x_bf16_tmp + o_dbl + params + h_tmp
    cap = _vmem_capacity_bytes()
    return int(min(max(needed + (8 << 20), 32 << 20), int(cap * 0.85)))


# ------------------------------ pallas wrapper --------------------------------

def _decoder_pixels(x_bcp, w1t, b1, w2t, b2):
    """x_bcp: (B, C_IN, HW) f32 -> (B, C_OUT, HW) f32.  No padding needed."""
    b, c_in, hw = x_bcp.shape
    n_hid = w1t.shape[0]
    c_out = w2t.shape[0]
    tn = _pick_pixel_tile(hw, c_in, b)
    grid = (b, _cdiv(hw, tn))            # ragged last block over-reads; its
                                         # garbage columns are never written.
    return pl.pallas_call(
        _decoder_kernel,
        out_shape=jax.ShapeDtypeStruct((b, c_out, hw), jnp.float32),
        grid_spec=pltpu.PrefetchScalarGridSpec(
            num_scalar_prefetch=0,
            grid=grid,
            in_specs=[
                # pixel tile: batch dim squeezed, channels x pixels (lane-dense)
                pl.BlockSpec((None, c_in, tn), lambda i, j: (i, 0, j)),
                # resident params (constant index_map -> fetched once)
                pl.BlockSpec((n_hid, c_in), lambda i, j: (0, 0)),
                pl.BlockSpec((n_hid, 1), lambda i, j: (0, 0)),
                pl.BlockSpec((c_out, n_hid), lambda i, j: (0, 0)),
                pl.BlockSpec((c_out, 1), lambda i, j: (0, 0)),
            ],
            out_specs=pl.BlockSpec((None, c_out, tn), lambda i, j: (i, 0, j)),
        ),
        compiler_params=pltpu.CompilerParams(
            dimension_semantics=("parallel", "parallel"),
            vmem_limit_bytes=_vmem_limit_bytes(c_in, n_hid, c_out, tn),
        ),
    )(x_bcp, w1t, b1, w2t, b2)


def _decoder_nchw(z_nchw, w1t, b1, w2t, b2):
    """(B, C_IN, H, W) -> (B, C_OUT, H, W) float32, consuming NCHW directly."""
    b, c, h, w = z_nchw.shape
    hw = h * w
    x = z_nchw.astype(jnp.float32).reshape(b, c, hw)   # .float(); no bf16 round trip
    out = _decoder_pixels(x, w1t, b1, w2t, b2)
    return out.reshape(b, w2t.shape[0], h, w)


_decoder_nchw_jit = jax.jit(_decoder_nchw)


def _decoder_seq(img_seq_prob, img_size, w1t, b1, w2t, b2):
    bs, seq_len, num_class = img_seq_prob.shape
    z = img_seq_prob.reshape(bs, img_size, img_size, num_class)
    # TODO(synk): a pixels-on-sublane kernel variant could consume (B, HW, C)
    #             directly and skip this transpose of the largest tensor.
    z = jnp.transpose(z, (0, 3, 1, 2)).astype(jnp.float32)
    return _decoder_nchw(z, w1t, b1, w2t, b2)


_decoder_seq_jit = jax.jit(_decoder_seq, static_argnums=(1,))


# ------------------------------ module wrapper -------------------------------

class DalleVAEPallas:
    """JAX/Pallas analogue of Dalle_VAE (decoder path of forward())."""

    def __init__(self, num_classes=256, n_hid=64, out_channels=6, seed=0):
        k1, k2, k3, k4 = jax.random.split(jax.random.PRNGKey(seed), 4)
        self.num_classes = num_classes
        w1 = jax.random.normal(k1, (num_classes, n_hid), jnp.float32) * 0.02
        w2 = jax.random.normal(k3, (n_hid, out_channels), jnp.float32) * 0.02
        # Stored pre-transposed for the pixels-on-lane layout; bf16 so the MXU
        # runs its native bf16 path and the resident VMEM footprint is halved.
        self.w1t = w1.T.astype(jnp.bfloat16)                      # (n_hid, C_IN)
        self.b1 = jax.random.normal(k2, (n_hid, 1), jnp.float32) * 0.02
        self.w2t = w2.T.astype(jnp.bfloat16)                      # (C_OUT, n_hid)
        self.b2 = jax.random.normal(k4, (out_channels, 1), jnp.float32) * 0.02

    def forward(self, img_seq_prob, img_size=None, no_process=True):
        if no_process:
            if img_seq_prob.ndim != 4:
                raise ValueError(
                    "no_process=True expects an NCHW (B, C, H, W) tensor; got "
                    f"shape {img_seq_prob.shape}")
            return _decoder_nchw_jit(img_seq_prob, self.w1t, self.b1,
                                     self.w2t, self.b2)
        else:
            if img_size is None:
                raise ValueError("img_size must be provided when no_process=False")
            return _decoder_seq_jit(img_seq_prob, int(img_size),
                                    self.w1t, self.b1, self.w2t, self.b2)

    def __call__(self, *args, **kwargs):
        return self.forward(*args, **kwargs)


# ---------------------------------- main -------------------------------------

if __name__ == "__main__":
    B, C_IN, H, W = 2, 256, 16, 16        # small stand-in for (B, 8192, 32, 32)
    N_HID, C_OUT = 64, 6
    vae = DalleVAEPallas(num_classes=C_IN, n_hid=N_HID, out_channels=C_OUT, seed=0)

    key = jax.random.PRNGKey(0)
    # no_process=True path: input is already an NCHW channel map.
    x = jax.random.normal(key, (B, C_IN, H, W), jnp.float32)

    out = jax.block_until_ready(vae(x, no_process=True))
    assert out.shape == (B, C_OUT, H, W) and out.dtype == jnp.float32

    # Pure-JAX reference with matching bf16 operands / f32 accumulation.
    w1t32 = vae.w1t.astype(jnp.float32)
    w2t32 = vae.w2t.astype(jnp.float32)
    xb = x.reshape(B, C_IN, H * W).astype(jnp.bfloat16).astype(jnp.float32)
    h_ref = jnp.einsum('hc,bcp->bhp', w1t32, xb, precision='highest')
    h_ref = jnp.maximum(h_ref + vae.b1[None], 0.0)
    h_b = h_ref.astype(jnp.bfloat16).astype(jnp.float32)
    ref = jnp.einsum('oh,bhp->bop', w2t32, h_b, precision='highest') + vae.b2[None]
    ref = ref.reshape(B, C_OUT, H, W)
    assert jnp.allclose(out, ref, atol=1e-2, rtol=1e-2)

    # no_process=False (flattened token-prob) path.
    x_seq = jnp.transpose(x, (0, 2, 3, 1)).reshape(B, H * W, C_IN)
    out2 = jax.block_until_ready(vae(x_seq, img_size=H, no_process=False))
    assert jnp.allclose(out2, ref, atol=1e-2, rtol=1e-2)

    # Non-multiple-of-128 pixel count exercises the ragged-last-block path.
    H2 = W2 = 12
    x_small = jax.random.normal(jax.random.PRNGKey(1), (B, C_IN, H2, W2), jnp.float32)
    out3 = jax.block_until_ready(vae(x_small, no_process=True))
    assert out3.shape == (B, C_OUT, H2, W2)
    xb2 = x_small.reshape(B, C_IN, H2 * W2).astype(jnp.bfloat16).astype(jnp.float32)
    h2 = jnp.maximum(
        jnp.einsum('hc,bcp->bhp', w1t32, xb2, precision='highest') + vae.b1[None], 0.0)
    h2b = h2.astype(jnp.bfloat16).astype(jnp.float32)
    ref3 = (jnp.einsum('oh,bhp->bop', w2t32, h2b, precision='highest')
            + vae.b2[None]).reshape(B, C_OUT, H2, W2)
    assert jnp.allclose(out3, ref3, atol=1e-2, rtol=1e-2)

    print("KERNEL_OK")
</pallas_src>

<mosaic_0001>
module attributes {stable_mosaic.version = 11 : i64} {
  func.func @_decoder_kernel(%arg0: i32, %arg1: i32, %arg2: memref<1x256x128xf32, #tpu.memory_space<vmem>>, %arg3: memref<64x256xbf16, #tpu.memory_space<vmem>>, %arg4: memref<64x1xf32, #tpu.memory_space<vmem>>, %arg5: memref<6x64xbf16, #tpu.memory_space<vmem>>, %arg6: memref<6x1xf32, #tpu.memory_space<vmem>>, %arg7: memref<1x6x128xf32, #tpu.memory_space<vmem>>) attributes {dimension_semantics = [#tpu.dimension_semantics<parallel>, #tpu.dimension_semantics<parallel>], iteration_bounds = array<i64: 2, 2>, scalar_prefetch = 0 : i64, scratch_operands = 0 : i64, tpu.core_type = #tpu.core_type<tc>, window_params = [{transform_indices = @transform_0, window_bounds = array<i64: 1, 256, 128>}, {pipeline_mode = #tpu.pipeline_mode<synchronous>, transform_indices = @transform_1, window_bounds = array<i64: 64, 256>}, {pipeline_mode = #tpu.pipeline_mode<synchronous>, transform_indices = @transform_2, window_bounds = array<i64: 64, 1>}, {pipeline_mode = #tpu.pipeline_mode<synchronous>, transform_indices = @transform_3, window_bounds = array<i64: 6, 64>}, {pipeline_mode = #tpu.pipeline_mode<synchronous>, transform_indices = @transform_4, window_bounds = array<i64: 6, 1>}, {transform_indices = @transform_5, window_bounds = array<i64: 1, 6, 128>}]} {
    %c0 = arith.constant 0 : index
    %c0_0 = arith.constant 0 : index
    %c0_1 = arith.constant 0 : index
    %0 = vector.load %arg2[%c0, %c0_0, %c0_1] : memref<1x256x128xf32, #tpu.memory_space<vmem>>, vector<1x256x128xf32>
    %1 = vector.shape_cast %0 : vector<1x256x128xf32> to vector<256x128xf32>
    %2 = arith.truncf %1 : vector<256x128xf32> to vector<256x128xbf16>
    %c0_2 = arith.constant 0 : index
    %c0_3 = arith.constant 0 : index
    %3 = vector.load %arg3[%c0_2, %c0_3] : memref<64x256xbf16, #tpu.memory_space<vmem>>, vector<64x256xbf16>
    %cst = arith.constant dense<0.000000e+00> : vector<64x128xf32>
    %4 = tpu.matmul %3, %2, %cst {dimension_numbers = #tpu.dot_dimension_numbers<[1], [0], [0], [1], [0, 0, 1, 1], [], []>} : vector<64x256xbf16>, vector<256x128xbf16>, vector<64x128xf32> -> vector<64x128xf32>
    %c0_4 = arith.constant 0 : index
    %c0_5 = arith.constant 0 : index
    %5 = vector.load %arg4[%c0_4, %c0_5] : memref<64x1xf32, #tpu.memory_space<vmem>>, vector<64x1xf32>
    %6 = vector.broadcast %5 : vector<64x1xf32> to vector<64x128xf32>
    %7 = arith.addf %4, %6 : vector<64x128xf32>
    %cst_6 = arith.constant 0.000000e+00 : f32
    %8 = vector.broadcast %cst_6 : f32 to vector<64x128xf32>
    %9 = arith.maximumf %7, %8 : vector<64x128xf32>
    %c0_7 = arith.constant 0 : index
    %c0_8 = arith.constant 0 : index
    %10 = vector.load %arg5[%c0_7, %c0_8] : memref<6x64xbf16, #tpu.memory_space<vmem>>, vector<6x64xbf16>
    %11 = arith.truncf %9 : vector<64x128xf32> to vector<64x128xbf16>
    %cst_9 = arith.constant dense<0.000000e+00> : vector<6x128xf32>
    %12 = tpu.matmul %10, %11, %cst_9 {dimension_numbers = #tpu.dot_dimension_numbers<[1], [0], [0], [1], [0, 0, 1, 1], [], []>} : vector<6x64xbf16>, vector<64x128xbf16>, vector<6x128xf32> -> vector<6x128xf32>
    %c0_10 = arith.constant 0 : index
    %c0_11 = arith.constant 0 : index
    %13 = vector.load %arg6[%c0_10, %c0_11] : memref<6x1xf32, #tpu.memory_space<vmem>>, vector<6x1xf32>
    %14 = vector.broadcast %13 : vector<6x1xf32> to vector<6x128xf32>
    %15 = arith.addf %12, %14 : vector<6x128xf32>
    %c0_12 = arith.constant 0 : index
    %c0_13 = arith.constant 0 : index
    %c0_14 = arith.constant 0 : index
    %16 = vector.load %arg7[%c0_12, %c0_13, %c0_14] : memref<1x6x128xf32, #tpu.memory_space<vmem>>, vector<1x6x128xf32>
    %17 = vector.shape_cast %16 : vector<1x6x128xf32> to vector<6x128xf32>
    %18 = vector.shape_cast %15 : vector<6x128xf32> to vector<1x6x128xf32>
    tpu.vector_store %arg7[%c0_12, %c0_13, %c0_14], %18 {strides = array<i32>} : memref<1x6x128xf32, #tpu.memory_space<vmem>>, vector<1x6x128xf32>,
    return
  }
  func.func @transform_0(%arg0: i32, %arg1: i32) -> (i32, i32, i32) {
    %c0_i32 = arith.constant 0 : i32
    %c0_i32_0 = arith.constant 0 : i32
    return %arg0, %c0_i32, %arg1 : i32, i32, i32
  }
  func.func @transform_1(%arg0: i32, %arg1: i32) -> (i32, i32) {
    %c0_i32 = arith.constant 0 : i32
    %c0_i32_0 = arith.constant 0 : i32
    %c0_i32_1 = arith.constant 0 : i32
    return %c0_i32, %c0_i32_0 : i32, i32
  }
  func.func @transform_2(%arg0: i32, %arg1: i32) -> (i32, i32) {
    %c0_i32 = arith.constant 0 : i32
    %c0_i32_0 = arith.constant 0 : i32
    %c0_i32_1 = arith.constant 0 : i32
    return %c0_i32, %c0_i32_0 : i32, i32
  }
  func.func @transform_3(%arg0: i32, %arg1: i32) -> (i32, i32) {
    %c0_i32 = arith.constant 0 : i32
    %c0_i32_0 = arith.constant 0 : i32
    %c0_i32_1 = arith.constant 0 : i32
    return %c0_i32, %c0_i32_0 : i32, i32
  }
  func.func @transform_4(%arg0: i32, %arg1: i32) -> (i32, i32) {
    %c0_i32 = arith.constant 0 : i32
    %c0_i32_0 = arith.constant 0 : i32
    %c0_i32_1 = arith.constant 0 : i32
    return %c0_i32, %c0_i32_0 : i32, i32
  }
  func.func @transform_5(%arg0: i32, %arg1: i32) -> (i32, i32, i32) {
    %c0_i32 = arith.constant 0 : i32
    %c0_i32_0 = arith.constant 0 : i32
    return %arg0, %c0_i32, %arg1 : i32, i32, i32
  }
}

</mosaic_0001>

<bundles_post_ra>
// kernel: _decoder_nchw.1
= control target key start
LH: loop header
LB: loop body
LE: loop exit
PB: predicated region body
PF: predicated region fallthrough
CT: control target
= control target key end

     0   :  { %s1010_s18 = smov 0   ;;  %s1012_s19 = smov 0   ;;  %s1257_s0 = inlined_call_operand.vmem [shape: f32[2,256,256], index: 0, kind: input, shape index: {}]   ;;  %s1258_s1 = inlined_call_operand.vmem [shape: bf16[64,256], index: 1, kind: input, shape index: {}]   ;;  %s1259_s2 = inlined_call_operand.vmem [shape: f32[64,1], index: 2, kind: input, shape index: {}]   ;;  %s1260_s3 = inlined_call_operand.vmem [shape: bf16[6,64], index: 3, kind: input, shape index: {}]   ;;  %s1261_s4 = inlined_call_operand.vmem [shape: f32[6,1], index: 4, kind: input, shape index: {}]   ;;  %s1262_s5 = inlined_call_operand.vmem [shape: f32[2,6,256], index: 5, kind: output, shape index: {}]  }
   0x1   :  { %s1014_s20 = smov 0   ;;  %s1016_s21 = smov 0  }
   0x2   :  { %s1018_s22 = smov 0   ;;  %s1020_s23 = smov 0  }
   0x3   :  { %s1022_s24 = smov 0  }
   0x4 LB: > { %s24_s25 = sadd.s32 1, %s967_s22  ;;  %s27_s26 = sadd.s32 1, %s971_s23  ;;  %s975_s24 = sphi %s1022_s24, %s15_s24   ;;  %s971_s23 = sphi %s1020_s23, %s1268_s23   ;;  %s967_s22 = sphi %s1018_s22, %s1267_s22   ;;  %s963_s21 = sphi %s1016_s21, %s1266_s21   ;;  %s959_s20 = sphi %s1014_s20, %s1265_s20   ;;  %s955_s19 = sphi %s1012_s19, %s1264_s19   ;;  %s951_s18 = sphi %s1010_s18, %s1263_s18  }
   0x5   : > { %p25_p0 = scmp.ge.s32.totalorder %s24_s25, 2  ;;  %p43_p1 = scmp.ne.s32.totalorder %s955_s19, %s951_s18 }
   0x6   : > { %p44_p2 = scmp.eq.s32.totalorder %s975_s24, 0  ;;  %s36_s30 = sadd.s32 1, %s955_s19 }
   0x7   : > { %s1270_s25 = smov (%p25_p0, %s24_s25), 0  ;;  %s1272_s26 = smov (!%p25_p0, %s27_s26), %s971_s23 }
   0x8   : > { %p45_p3 = por %p44_p2, %p43_p1  ;;  %p29_p4 = scmp.ge.s32.totalorder %s1272_s26, 2 }
   0x9   : > { %s32_s27 = ssub.s32 %s967_s22, %s1270_s25  ;;  %p772_p6 = scmp.ge.s32.totalorder %s975_s24, 4 }
   0xa   : > { %s1274_s26 = smov (%p29_p4, %s1272_s26), 0 }
   0xb   : > { %s31_s28 = ssub.s32 %s971_s23, %s1274_s26  ;;  %193 = sbr.rel (%p772_p6) target bundleno = 40 (0x28), region = 32 }
   0xc   : > { %s33_s29 = sor.u32 %s32_s27, %s31_s28 }
   0xd   : > { %p34_p5 = scmp.eq.s32.totalorder %s33_s29, 0 }
   0xf   : > { %s1061_s6 = scalar_select %p34_p5, %s955_s19, %s36_s30  }
  0x12   : > { %196 = sbr.rel (!%p45_p3) target bundleno = 40 (0x28), region = 36  ;;  %s198_s7 = sand.u32 (%p45_p3), 1, %s955_s19  }
  0x13   : > { %s774_s8 = sshll.u32 (%p45_p3), %s971_s23, 6  ;;  %s773_s9 = sshll.u32 (%p45_p3), %s198_s7, 8 }
  0x14   : > { %s202_s10 = sadd.s32 (%p45_p3), %s967_s22, %s774_s8  ;;  %s1075_s15 = scalar_lea.vmem (%p45_p3), [#allocation2], %s773_s9 }
  0x15   : > { %s775_s11 = sshll.u32 (%p45_p3), %s202_s10, 3 }
  0x16   : > { %s1070_s14 = scalar_lea.vmem (%p45_p3), %s1257_s0, %s775_s11 }
  0x17   : > { %v294_v0 = vld [vmem:[%s1070_s14] sm:$0xff] (%p45_p3)  ;;  %v296_v1 = vld [vmem:[%s1070_s14 + $0x10] sm:$0xff] (%p45_p3) }
  0x18   : > { %v298_v2 = vld [vmem:[%s1070_s14 + $0x20] sm:$0xff] (%p45_p3)  ;;  %295 = vst [vmem:[%s1075_s15] sm:$0xff] (%p45_p3), %v294_v0  ;;  %297 = vst [vmem:[%s1075_s15 + $0x8] sm:$0xff] (%p45_p3), %v296_v1  ;;  %v300_v3 = vld [vmem:[%s1070_s14 + $0x30] sm:$0xff] (%p45_p3) }
  0x19   : > { %299 = vst [vmem:[%s1075_s15 + $0x10] sm:$0xff] %v298_v2  ;;  %v302_v4 = vld [vmem:[%s1070_s14 + $0x40] sm:$0xff]  ;;  %v304_v5 = vld [vmem:[%s1070_s14 + $0x50] sm:$0xff]  ;;  %301 = vst [vmem:[%s1075_s15 + $0x18] sm:$0xff] %v300_v3 }
  0x1a   : > { %303 = vst [vmem:[%s1075_s15 + $0x20] sm:$0xff] %v302_v4  ;;  %305 = vst [vmem:[%s1075_s15 + $0x28] sm:$0xff] %v304_v5  ;;  %v306_v6 = vld [vmem:[%s1070_s14 + $0x60] sm:$0xff]  ;;  %v308_v7 = vld [vmem:[%s1070_s14 + $0x70] sm:$0xff] }
  0x1b   : > { %v310_v8 = vld [vmem:[%s1070_s14 + $0x80] sm:$0xff]  ;;  %307 = vst [vmem:[%s1075_s15 + $0x30] sm:$0xff] %v306_v6  ;;  %309 = vst [vmem:[%s1075_s15 + $0x38] sm:$0xff] %v308_v7  ;;  %v312_v9 = vld [vmem:[%s1070_s14 + $0x90] sm:$0xff] }
  0x1c   : > { %311 = vst [vmem:[%s1075_s15 + $0x40] sm:$0xff] %v310_v8  ;;  %v314_v10 = vld [vmem:[%s1070_s14 + $0xa0] sm:$0xff]  ;;  %v316_v11 = vld [vmem:[%s1070_s14 + $0xb0] sm:$0xff]  ;;  %313 = vst [vmem:[%s1075_s15 + $0x48] sm:$0xff] %v312_v9 }
  0x1d   : > { %315 = vst [vmem:[%s1075_s15 + $0x50] sm:$0xff] %v314_v10  ;;  %317 = vst [vmem:[%s1075_s15 + $0x58] sm:$0xff] %v316_v11  ;;  %v318_v12 = vld [vmem:[%s1070_s14 + $0xc0] sm:$0xff]  ;;  %v320_v13 = vld [vmem:[%s1070_s14 + $0xd0] sm:$0xff] }
  0x1e   : > { %v322_v14 = vld [vmem:[%s1070_s14 + $0xe0] sm:$0xff]  ;;  %319 = vst [vmem:[%s1075_s15 + $0x60] sm:$0xff] %v318_v12  ;;  %321 = vst [vmem:[%s1075_s15 + $0x68] sm:$0xff] %v320_v13  ;;  %v324_v15 = vld [vmem:[%s1070_s14 + $0xf0] sm:$0xff] }
  0x1f   : > { %323 = vst [vmem:[%s1075_s15 + $0x70] sm:$0xff] %v322_v14  ;;  %v326_v16 = vld [vmem:[%s1070_s14 + $0x100] sm:$0xff]  ;;  %v328_v17 = vld [vmem:[%s1070_s14 + $0x110] sm:$0xff]  ;;  %325 = vst [vmem:[%s1075_s15 + $0x78] sm:$0xff] %v324_v15 }
  0x20   : > { %327 = vst [vmem:[%s1075_s15 + $0x80] sm:$0xff] %v326_v16  ;;  %329 = vst [vmem:[%s1075_s15 + $0x88] sm:$0xff] %v328_v17  ;;  %v330_v18 = vld [vmem:[%s1070_s14 + $0x120] sm:$0xff]  ;;  %v332_v19 = vld [vmem:[%s1070_s14 + $0x130] sm:$0xff] }
  0x21   : > { %v334_v20 = vld [vmem:[%s1070_s14 + $0x140] sm:$0xff]  ;;  %331 = vst [vmem:[%s1075_s15 + $0x90] sm:$0xff] %v330_v18  ;;  %333 = vst [vmem:[%s1075_s15 + $0x98] sm:$0xff] %v332_v19  ;;  %v336_v21 = vld [vmem:[%s1070_s14 + $0x150] sm:$0xff] }
  0x22   : > { %335 = vst [vmem:[%s1075_s15 + $0xa0] sm:$0xff] %v334_v20  ;;  %v338_v22 = vld [vmem:[%s1070_s14 + $0x160] sm:$0xff]  ;;  %v340_v23 = vld [vmem:[%s1070_s14 + $0x170] sm:$0xff]  ;;  %337 = vst [vmem:[%s1075_s15 + $0xa8] sm:$0xff] %v336_v21 }
  0x23   : > { %339 = vst [vmem:[%s1075_s15 + $0xb0] sm:$0xff] %v338_v22  ;;  %341 = vst [vmem:[%s1075_s15 + $0xb8] sm:$0xff] %v340_v23  ;;  %v342_v24 = vld [vmem:[%s1070_s14 + $0x180] sm:$0xff]  ;;  %v344_v25 = vld [vmem:[%s1070_s14 + $0x190] sm:$0xff] }
  0x24   : > { %v346_v26 = vld [vmem:[%s1070_s14 + $0x1a0] sm:$0xff]  ;;  %343 = vst [vmem:[%s1075_s15 + $0xc0] sm:$0xff] %v342_v24  ;;  %345 = vst [vmem:[%s1075_s15 + $0xc8] sm:$0xff] %v344_v25  ;;  %v348_v27 = vld [vmem:[%s1070_s14 + $0x1b0] sm:$0xff] }
  0x25   : > { %347 = vst [vmem:[%s1075_s15 + $0xd0] sm:$0xff] %v346_v26  ;;  %v350_v28 = vld [vmem:[%s1070_s14 + $0x1c0] sm:$0xff]  ;;  %v352_v29 = vld [vmem:[%s1070_s14 + $0x1d0] sm:$0xff]  ;;  %349 = vst [vmem:[%s1075_s15 + $0xd8] sm:$0xff] %v348_v27 }
  0x26   : > { %351 = vst [vmem:[%s1075_s15 + $0xe0] sm:$0xff] %v350_v28  ;;  %353 = vst [vmem:[%s1075_s15 + $0xe8] sm:$0xff] %v352_v29  ;;  %v354_v30 = vld [vmem:[%s1070_s14 + $0x1e0] sm:$0xff]  ;;  %v356_v31 = vld [vmem:[%s1070_s14 + $0x1f0] sm:$0xff] }
  0x27   : > { %355 = vst [vmem:[%s1075_s15 + $0xf0] sm:$0xff] %v354_v30  ;;  %357 = vst [vmem:[%s1075_s15 + $0xf8] sm:$0xff] %v356_v31 }
  0x28 PF: > { %p776_p7 = scmp.ge.s32.totalorder %s975_s24, 1  ;;  %p362_p8 = scmp.lt.s32.totalorder %s975_s24, 5 }
  0x2a   : > { %p363_p9 = pnand %p776_p7, %p362_p8 }
  0x2b   : > { %s369_s16 = sand.u32 (!%p363_p9), 1, %s951_s18   ;;  %v911_v32 = vld [vmem:[%s1258_s1 + $0x4] ss:$8 sps:$4 sm:$0xff] (!%p363_p9)   ;;  %v977_v33 = vmov (!%p363_p9), 0   ;;  %v466_v0 = vld [vmem:[%s1259_s2 + $0x10] sm:$0xff] (!%p363_p9)  ;;  %v467_v4 = vld [vmem:[%s1259_s2 + $0x18] sm:$0xff] (!%p363_p9) }
  0x2c   : > { %366 = sbr.rel (%p363_p9) target bundleno = 546 (0x222), region = 74  ;;  %s777_s17 = sshll.u32 (!%p363_p9), %s369_s16, 8  ;;  %907 = vset.pattern.permute.xlu0 (!%p363_p9), %v977_v33  ;;  %908 = vset.pattern.permute.xlu1 (!%p363_p9), %v977_v33  ;;  %v464_v63 = vld [vmem:[%s1259_s2] sm:$0xff] (!%p363_p9)  ;;  %v465_v3 = vld [vmem:[%s1259_s2 + $0x8] sm:$0xff] (!%p363_p9)  ;;  %v470_v19 = vld [vmem:[%s1259_s2 + $0x30] sm:$0xff] (!%p363_p9)  ;;  %vm979_vm0 = vmmov (!%p363_p9), 0  }
  0x2d   : > { %s1144_s29 = scalar_lea.vmem (!%p363_p9), [#allocation2], %s777_s17  ;;  %584 = vmatprep.mubr.bf16.mxu0 (!%p363_p9), %v911_v32  ;;  %474 = vperm.xlu0 (!%p363_p9), %907, %v464_v63   ;;  %v468_v11 = vld [vmem:[%s1259_s2 + $0x20] sm:$0xff] (!%p363_p9)  ;;  %v469_v12 = vld [vmem:[%s1259_s2 + $0x28] sm:$0xff] (!%p363_p9)  ;;  %v471_v20 = vld [vmem:[%s1259_s2 + $0x38] sm:$0xff] (!%p363_p9)  ;;  %vm636_vm1 = vcmask (!%p363_p9), 523264   ;;  %p399_p10 = scmp.lt.s32.totalorder (!%p363_p9), %s963_s21, 1 }
  0x2e   : > { %v424_v34 = vld [vmem:[%s1144_s29 + $0x80] sm:$0xff] (!%p363_p9)  ;;  %v425_v35 = vld [vmem:[%s1144_s29 + $0x88] sm:$0xff] (!%p363_p9)  ;;  %v426_v39 = vld [vmem:[%s1144_s29 + $0x90] sm:$0xff] (!%p363_p9)  ;;  %484 = vperm.xlu1 (!%p363_p9), %908, %v466_v0   ;;  %p401_p11 = scmp.lt.s32.totalorder (!%p363_p9), %s959_s20, 1 }
  0x2f   : > { %v408_v36 = vld [vmem:[%s1144_s29] sm:$0xff] (!%p363_p9)  ;;  %v448_v37 = vpack.c.bf16 (!%p363_p9), %v425_v35, %v424_v34  ;;  %v409_v38 = vld [vmem:[%s1144_s29 + $0x8] sm:$0xff] (!%p363_p9)  ;;  %v427_v40 = vld [vmem:[%s1144_s29 + $0x98] sm:$0xff] (!%p363_p9)  ;;  %v978_v34 = vmov (!%p363_p9), 0.0  }
  0x30   : > { %v440_v41 = vpack.c.bf16 (!%p363_p9), %v409_v38, %v408_v36  ;;  %v449_v42 = vpack.c.bf16 (!%p363_p9), %v427_v40, %v426_v39  ;;  %v410_v43 = vld [vmem:[%s1144_s29 + $0x10] sm:$0xff] (!%p363_p9)  ;;  %v411_v44 = vld [vmem:[%s1144_s29 + $0x18] sm:$0xff] (!%p363_p9)  ;;  %v428_v45 = vld [vmem:[%s1144_s29 + $0xa0] sm:$0xff] (!%p363_p9)  ;;  %836 = vmatprep.subr.bf16.mxu1 (!%p363_p9), %v978_v34  ;;  %844 = vmatprep.mubr.msk.bf16.mxu1 (!%p363_p9), %vm979_vm0, %v978_v34 }
  0x31   : > { %791 = vmatprep.subr.bf16.mxu0 (!%p363_p9), %v448_v37  ;;  %v429_v46 = vld [vmem:[%s1144_s29 + $0xa8] sm:$0xff] (!%p363_p9)  ;;  %v441_v47 = vpack.c.bf16 (!%p363_p9), %v411_v44, %v410_v43  ;;  %v412_v49 = vld [vmem:[%s1144_s29 + $0x20] sm:$0xff] (!%p363_p9)  ;;  %v430_v51 = vld [vmem:[%s1144_s29 + $0xb0] sm:$0xff] (!%p363_p9)  ;;  %479 = vperm.xlu0 (!%p363_p9), %907, %v465_v3  }
  0x32   : > { %792 = vmatpush3.bf16.msra.mxu0 (!%p363_p9), %v440_v41  ;;  %v450_v48 = vpack.c.bf16 (!%p363_p9), %v429_v46, %v428_v45  ;;  %v413_v50 = vld [vmem:[%s1144_s29 + $0x28] sm:$0xff] (!%p363_p9)  ;;  %v431_v52 = vld [vmem:[%s1144_s29 + $0xb8] sm:$0xff] (!%p363_p9)  ;;  %v414_v55 = vld [vmem:[%s1144_s29 + $0x30] sm:$0xff] (!%p363_p9)  ;;  %489 = vperm.xlu1 (!%p363_p9), %908, %v467_v4  }
  0x33   : > { %793 = vmatprep.subr.bf16.mxu0 %v449_v42  ;;  %v442_v53 = vpack.c.bf16 %v413_v50, %v412_v49  ;;  %v451_v54 = vpack.c.bf16 %v431_v52, %v430_v51  ;;  %v415_v56 = vld [vmem:[%s1144_s29 + $0x38] sm:$0xff]  ;;  %v432_v57 = vld [vmem:[%s1144_s29 + $0xc0] sm:$0xff]  ;;  %v433_v58 = vld [vmem:[%s1144_s29 + $0xc8] sm:$0xff]  ;;  %s1276_s21 = smov (!%p399_p10, %s963_s21), 1  ;;  %s1278_s20 = smov (!%p401_p11, %s959_s20), 1 }
  0x34   : > { %v443_v59 = vpack.c.bf16 %v415_v56, %v414_v55  ;;  %v416_v60 = vld [vmem:[%s1144_s29 + $0x40] sm:$0xff]  ;;  %v452_v61 = vpack.c.bf16 %v433_v58, %v432_v57  ;;  %v417_v62 = vld [vmem:[%s1144_s29 + $0x48] sm:$0xff]  ;;  %v434_v1 = vld [vmem:[%s1144_s29 + $0xd0] sm:$0xff]  ;;  %s778_s8 = sshll.u32 %s1276_s21, 1 }
  0x35   : > { %v435_v2 = vld [vmem:[%s1144_s29 + $0xd8] sm:$0xff]  ;;  %v444_v5 = vpack.c.bf16 %v417_v62, %v416_v60  ;;  %v418_v7 = vld [vmem:[%s1144_s29 + $0x50] sm:$0xff]  ;;  %v436_v9 = vld [vmem:[%s1144_s29 + $0xe0] sm:$0xff]  ;;  %494 = vperm.xlu0 %907, %v468_v11   ;;  %s404_s9 = sadd.s32 %s778_s8, %s1278_s20 }
  0x36   : > { %794 = vmatpush3.bf16.msra.mxu0 %v441_v47  ;;  %v453_v6 = vpack.c.bf16 %v435_v2, %v434_v1  ;;  %v419_v8 = vld [vmem:[%s1144_s29 + $0x58] sm:$0xff]  ;;  %v437_v10 = vld [vmem:[%s1144_s29 + $0xe8] sm:$0xff]  ;;  %v420_v15 = vld [vmem:[%s1144_s29 + $0x60] sm:$0xff]  ;;  %499 = vperm.xlu1 %908, %v469_v12   ;;  %s779_s10 = sshll.u32 %s404_s9, 3 }
  0x37   : > { %795 = vmatprep.subr.bf16.mxu0 %v450_v48  ;;  %v445_v13 = vpack.c.bf16 %v419_v8, %v418_v7  ;;  %v454_v14 = vpack.c.bf16 %v437_v10, %v436_v9  ;;  %v421_v16 = vld [vmem:[%s1144_s29 + $0x68] sm:$0xff]  ;;  %v438_v17 = vld [vmem:[%s1144_s29 + $0xf0] sm:$0xff]  ;;  %v439_v18 = vld [vmem:[%s1144_s29 + $0xf8] sm:$0xff]  ;;  %s406_s12 = scalar_lea.vmem %s1262_s5, %s779_s10 }
  0x38   : > { %v446_v21 = vpack.c.bf16 %v421_v16, %v420_v15  ;;  %v455_v22 = vpack.c.bf16 %v439_v18, %v438_v17  ;;  %v422_v23 = vld [vmem:[%s1144_s29 + $0x70] sm:$0xff]  ;;  %v423_v24 = vld [vmem:[%s1144_s29 + $0x78] sm:$0xff]  ;;  %v630_v25 = vld [vmem:[%s1261_s4] sm:$0x3f] }
  0x39   : > { %504 = vperm.xlu0 %907, %v470_v19   ;;  %v447_v26 = vpack.c.bf16 %v423_v24, %v422_v23  ;;  %v909_v27 = vld [vmem:[%s1258_s1] ss:$8 sps:$4 sm:$0xff]   ;;  %v912_v28 = vld [vmem:[%s1258_s1 + $0x14] ss:$8 sps:$4 sm:$0xff]   ;;  %v914_v29 = vld [vmem:[%s1258_s1 + $0x10] ss:$8 sps:$4 sm:$0xff]  }
  0x3a   : > { %796 = vmatpush3.bf16.msra.mxu0 %v442_v53  ;;  %509 = vperm.xlu1 %908, %v471_v20   ;;  %v915_v30 = vld [vmem:[%s1258_s1 + $0x24] ss:$8 sps:$4 sm:$0xff]   ;;  %v917_v31 = vld [vmem:[%s1258_s1 + $0x20] ss:$8 sps:$4 sm:$0xff]   ;;  %v918_v32 = vld [vmem:[%s1258_s1 + $0x34] ss:$8 sps:$4 sm:$0xff]  }
  0x3b   : > { %797 = vmatprep.subr.bf16.mxu0 %v451_v54  ;;  %v920_v33 = vld [vmem:[%s1258_s1 + $0x30] ss:$8 sps:$4 sm:$0xff]   ;;  %v625_v23 = vld [vmem:[%s1260_s3] sm:$0x7] }
  0x3d   : > { %633 = vperm.xlu0 %907, %v630_v25  }
  0x3e   : > { %798 = vmatpush3.bf16.msra.mxu0 %v443_v59 }
  0x3f   : > { %799 = vmatprep.subr.bf16.mxu0 %v452_v61 }
  0x42   : > { %800 = vmatpush3.bf16.msra.mxu0 %v444_v5 }
  0x43   : > { %801 = vmatprep.subr.bf16.mxu0 %v453_v6 }
  0x46   : > { %802 = vmatpush3.bf16.msra.mxu0 %v445_v13 }
  0x47   : > { %803 = vmatprep.subr.bf16.mxu0 %v454_v14 }
  0x4a   : > { %804 = vmatpush3.bf16.msra.mxu0 %v446_v21 }
  0x4b   : > { %805 = vmatprep.subr.bf16.mxu0 %v455_v22 }
  0x4e   : > { %806 = vmatpush3.bf16.msra.mxu0 %v447_v26 }
  0x51   : > { %585 = vmatmul.mubr.bf16.vlgmr.msra.gmra.mrb[0].mxu0 %v909_v27 }
  0x52   : > { %592 = vmatprep.mubr.bf16.mxu0 %v912_v28 }
  0x59   : > { %593 = vmatmul.mubr.bf16.gmra.mrb[4].mxu0 %v914_v29 }
  0x5a   : > { %600 = vmatprep.mubr.bf16.mxu0 %v915_v30 }
  0x61   : > { %601 = vmatmul.mubr.bf16.gmra.mrb[8].mxu0 %v917_v31 }
  0x62   : > { %608 = vmatprep.mubr.bf16.mxu0 %v918_v32 }
  0x69   : > { %609 = vmatmul.mubr.bf16.gmra.mrb[12].mxu0 %v920_v33 }
  0xac   : > { %v475_v35 = vpop.permute.xlu0 %474 }
  0xad   : > { %v485_v45 = vpop.permute.xlu1 %484 }
  0xb0   : > { %v480_v43 = vpop.permute.xlu0 %479 }
  0xb1   : > { %v490_v56 = vpop.permute.xlu1 %489 }
  0xb4   : > { %v495_v1 = vpop.permute.xlu0 %494 }
  0xb5   : > { %v500_v5 = vpop.permute.xlu1 %499 }
  0xb8   : > { %v505_v14 = vpop.permute.xlu0 %504 }
  0xb9   : > { %v510_v18 = vpop.permute.xlu1 %509 }
  0xbc   : > { %v634_v24 = vpop.permute.xlu0 %633 }
 0x124   : > { %v807_v36 = vpop.f32.mrb[0].mxu0 }
 0x125   : > { %v808_v37 = vpop.f32.mrb[1].mxu0 }
 0x126   : > { %v809_v38 = vadd.f32 %v808_v37, %v807_v36  ;;  %v810_v39 = vpop.f32.mrb[2].mxu0 }
 0x127   : > { %v811_v40 = vpop.f32.mrb[3].mxu0 }
 0x128   : > { %v587_v41 = vadd.f32 %v809_v38, %v475_v35  ;;  %v812_v42 = vadd.f32 %v811_v40, %v810_v39 }
 0x12a   : > { %v590_v44 = vadd.f32 %v812_v42, %v480_v43  ;;  %v617_v46 = vmax.f32 %v587_v41, 0.0 }
 0x12c   : > { %v618_v47 = vmax.f32 %v590_v44, 0.0  ;;  %v813_v48 = vpop.f32.mrb[4].mxu0 }
 0x12d   : > { %v814_v49 = vpop.f32.mrb[5].mxu0 }
 0x12e   : > { %v815_v50 = vadd.f32 %v814_v49, %v813_v48  ;;  %v816_v51 = vpop.f32.mrb[6].mxu0  ;;  %v626_v52 = vpack.c.bf16 %v618_v47, %v617_v46 }
 0x12f   : > { %v817_v53 = vpop.f32.mrb[7].mxu0 }
 0x130   : > { %v595_v54 = vadd.f32 %v815_v50, %v485_v45  ;;  %v818_v55 = vadd.f32 %v817_v53, %v816_v51  ;;  %837 = vmatpush3.bf16.msra.mxu1 %v626_v52 }
 0x131   : > { %838 = vmatprep.subr.bf16.mxu1 %v978_v34 }
 0x132   : > { %v598_v57 = vadd.f32 %v818_v55, %v490_v56  ;;  %v619_v58 = vmax.f32 %v595_v54, 0.0 }
 0x134   : > { %v620_v59 = vmax.f32 %v598_v57, 0.0  ;;  %v819_v60 = vpop.f32.mrb[8].mxu0 }
 0x135   : > { %v820_v61 = vpop.f32.mrb[9].mxu0 }
 0x136   : > { %v821_v62 = vadd.f32 %v820_v61, %v819_v60  ;;  %v822_v63 = vpop.f32.mrb[10].mxu0  ;;  %v627_v0 = vpack.c.bf16 %v620_v59, %v619_v58 }
 0x137   : > { %v823_v2 = vpop.f32.mrb[11].mxu0 }
 0x138   : > { %v603_v3 = vadd.f32 %v821_v62, %v495_v1  ;;  %v824_v4 = vadd.f32 %v823_v2, %v822_v63  ;;  %839 = vmatpush3.bf16.msra.mxu1 %v627_v0 }
 0x139   : > { %840 = vmatprep.subr.bf16.mxu1 %v978_v34 }
 0x13a   : > { %v606_v6 = vadd.f32 %v824_v4, %v500_v5  ;;  %v621_v7 = vmax.f32 %v603_v3, 0.0 }
 0x13c   : > { %v622_v8 = vmax.f32 %v606_v6, 0.0  ;;  %v825_v9 = vpop.f32.mrb[12].mxu0 }
 0x13d   : > { %v826_v10 = vpop.f32.mrb[13].mxu0 }
 0x13e   : > { %v827_v11 = vadd.f32 %v826_v10, %v825_v9  ;;  %v828_v12 = vpop.f32.mrb[14].mxu0  ;;  %v628_v13 = vpack.c.bf16 %v622_v8, %v621_v7 }
 0x13f   : > { %v829_v15 = vpop.f32.mrb[15].mxu0 }
 0x140   : > { %v611_v16 = vadd.f32 %v827_v11, %v505_v14  ;;  %v830_v17 = vadd.f32 %v829_v15, %v828_v12  ;;  %841 = vmatpush3.bf16.msra.mxu1 %v628_v13 }
 0x141   : > { %842 = vmatprep.subr.bf16.mxu1 %v978_v34 }
 0x142   : > { %v614_v19 = vadd.f32 %v830_v17, %v510_v18  ;;  %v623_v20 = vmax.f32 %v611_v16, 0.0 }
 0x144   : > { %v624_v21 = vmax.f32 %v614_v19, 0.0 }
 0x146   : > { %v629_v22 = vpack.c.bf16 %v624_v21, %v623_v20 }
 0x148   : > { %843 = vmatpush3.bf16.msra.mxu1 %v629_v22 }
 0x14b   : > { %845 = vmatmul.mubr.msk.bf16.vlgmr.msra.gmra.mrb[0].mxu1 %vm636_vm1, %v625_v23 }
 0x21e   : > { %v674_v25 = vpop.f32.mrb[0].mxu1 }
 0x21f   : > { %v675_v26 = vadd.f32 %v674_v25, %v634_v24  ;;  %v846_v27 = vpop.f32.mrb[1].mxu1 }
 0x220   : > { %v677_v28 = vpop.f32.mrb[2].mxu1 }
 0x221   : > { %680 = vst [vmem:[%s406_s12] sm:$0x3f] %v675_v26  ;;  %v847_v29 = vpop.f32.mrb[3].mxu1 }
 0x222 PF: > { %s15_s24 = sadd.s32 1, %s975_s24   ;;  %s1263_s18 = smov %s955_s19 }
 0x223   : > { %p12_p12 = scmp.ge.s32.totalorder %s15_s24, 6   ;;  %s1264_s19 = smov %s1061_s6 }
 0x224   : > { %s1265_s20 = smov %s967_s22  ;;  %s1266_s21 = smov %s971_s23 }
 0x225   : > { %s1267_s22 = smov %s1270_s25  ;;  %s1268_s23 = smov %s1274_s26 }
 0x226   :  { %14 = sbr.rel (!%p12_p12) target bundleno = 4 (0x4), region = 113 }

</bundles_post_ra>
